<compile_context>
chip_gen: v6e
topology: v6e:2x2x1
jax: 0.10.0
libtpu: 0.0.40
codegen_flags: <defaults>
</compile_context>

<pallas_src>
import functools

import numpy as np
import jax
import jax.numpy as jnp
from jax import lax
from jax.experimental import pallas as pl
from jax.experimental.pallas import tpu as pltpu


# ---------------------------------------------------------------------------
# Fused kernel
# ---------------------------------------------------------------------------
def _down_kernel(x_ref, w1_ref, b1_ref, w2_ref, b2_ref, w3_ref, b3_ref,
                 w4_ref, b4_ref, o_ref, pad_a, pad_b, *, Hp, Wp, Cin, Cout):
    """One batch element of Down.

    x_ref : (1, 2, 2, Hp, Wp*Cin)  input pre-arranged as (dy, dx, row, x*C+c)
    wK_ref: (3, Wp*CinK, Wp*CoutK) row-banded conv weights (BN folded)
    bK_ref: (1, Wp*CoutK)          lane-tiled BN-folded bias
    b4_ref: (1, 1, Wp*Cout)        per-batch bias4 + time-embedding
    o_ref : (1, Hp, Wp*Cout)
    pad_a : VMEM (3, Hp, Wp*Cin)   H-halo scratch (plane 1 = data, 0/2 = zeros)
    pad_b : VMEM (3, Hp, Wp*Cout)
    """
    f32 = jnp.float32
    La = Wp * Cin
    Lb = Wp * Cout

    # Zero halo row-planes each grid step (data plane is always overwritten).
    pad_a[0] = jnp.zeros((Hp, La), f32)
    pad_a[2] = jnp.zeros((Hp, La), f32)
    pad_b[0] = jnp.zeros((Hp, Lb), f32)
    pad_b[2] = jnp.zeros((Hp, Lb), f32)

    # ---- MaxPool2d(2): elementwise max over the four (dy, dx) planes ------
    xp = jnp.maximum(jnp.maximum(x_ref[0, 0, 0], x_ref[0, 0, 1]),
                     jnp.maximum(x_ref[0, 1, 0], x_ref[0, 1, 1]))   # (Hp, La)

    # ---- 3x3 SAME conv + folded BN: 3 row-banded matmuls, bias as init ----
    def conv(pad_ref, a2d, w_ref, bias):
        L = a2d.shape[-1]
        pad_ref[1] = a2d                          # halo planes stay zero
        full = pad_ref[...].reshape(3 * Hp, L)    # rows Hp..2Hp-1 = data
        acc = jnp.dot(full[Hp - 1:2 * Hp - 1], w_ref[0],
                      preferred_element_type=f32)
        acc = acc + jnp.dot(full[Hp:2 * Hp], w_ref[1],
                            preferred_element_type=f32)
        acc = acc + jnp.dot(full[Hp + 1:2 * Hp + 1], w_ref[2],
                            preferred_element_type=f32)
        return acc + bias

    # DoubleConv(in, in, residual=True)
    h1 = jnp.maximum(conv(pad_a, xp, w1_ref, b1_ref[...]), 0.0)        # (Hp, La)
    h2 = jnp.maximum(conv(pad_a, h1, w2_ref, b2_ref[...]) + xp, 0.0)   # +residual
    # DoubleConv(in, out)
    h3 = jnp.maximum(conv(pad_a, h2, w3_ref, b3_ref[...]), 0.0)        # (Hp, Lb)
    h4 = conv(pad_b, h3, w4_ref, b4_ref[0])      # bias already includes emb
    o_ref[0] = h4.astype(o_ref.dtype)


# ---------------------------------------------------------------------------
# Wrapper-side layout plumbing
# ---------------------------------------------------------------------------
def _band_weights(w_hwio, Wp):
    """(3,3,Cin,Cout) HWIO weight -> (3, Wp*Cin, Wp*Cout) row-banded matrices.

    band[dy, j*Cin+c, x*Cout+o] = w[dy, j-x+1, c, o] for j-x+1 in {0,1,2},
    so the x-direction taps and SAME x-padding are absorbed into the matmul.
    """
    _, _, ci, co = w_hwio.shape
    sel = np.zeros((3, Wp, Wp), np.float32)           # sel[dx, x, j]
    for dx in range(3):
        for x in range(Wp):
            j = x + dx - 1
            if 0 <= j < Wp:
                sel[dx, x, j] = 1.0
    m = jnp.einsum('axj,yaco->yjcxo', jnp.asarray(sel), w_hwio)
    return m.reshape(3, Wp * ci, Wp * co)


def down_forward(x_nchw, t, p):
    N, Cin, H, W = x_nchw.shape
    Hp, Wp = H // 2, W // 2
    Cout = p["w3"].shape[-1]
    La, Lb = Wp * Cin, Wp * Cout

    # NCHW -> (N, dy, dx, row, x*Cin + c): pooling pairs on leading dims,
    # lane-packed (x, c) on the 128-lane dim.  Pure boundary glue.
    xr = (x_nchw.reshape(N, Cin, Hp, 2, Wp, 2)
                .transpose(0, 3, 5, 2, 4, 1)
                .reshape(N, 2, 2, Hp, La))

    # Banded weights + lane-tiled biases (BN already folded into w/b).
    w1 = _band_weights(p["w1"], Wp)
    w2 = _band_weights(p["w2"], Wp)
    w3 = _band_weights(p["w3"], Wp)
    w4 = _band_weights(p["w4"], Wp)
    b1 = jnp.tile(p["b1"][None, :], (1, Wp))                     # (1, La)
    b2 = jnp.tile(p["b2"][None, :], (1, Wp))                     # (1, La)
    b3 = jnp.tile(p["b3"][None, :], (1, Wp))                     # (1, Lb)

    # emb_layer (ReLU -> Linear) in plain JAX, folded into conv4's bias.
    emb = jnp.maximum(t, 0.0) @ p["wl"] + p["bl"]                # (N, Cout)
    b4e = jnp.tile(p["b4"][None, :] + emb, (1, Wp)).reshape(N, 1, Lb)

    kernel = functools.partial(_down_kernel, Hp=Hp, Wp=Wp, Cin=Cin, Cout=Cout)
    out = pl.pallas_call(
        kernel,
        out_shape=jax.ShapeDtypeStruct((N, Hp, Lb), jnp.float32),
        grid_spec=pltpu.PrefetchScalarGridSpec(
            num_scalar_prefetch=0, grid=(N,),
            in_specs=[
                pl.BlockSpec((1, 2, 2, Hp, La), lambda n: (n, 0, 0, 0, 0)),
                pl.BlockSpec((3, La, La), lambda n: (0, 0, 0)),
                pl.BlockSpec((1, La), lambda n: (0, 0)),
                pl.BlockSpec((3, La, La), lambda n: (0, 0, 0)),
                pl.BlockSpec((1, La), lambda n: (0, 0)),
                pl.BlockSpec((3, La, Lb), lambda n: (0, 0, 0)),
                pl.BlockSpec((1, Lb), lambda n: (0, 0)),
                pl.BlockSpec((3, Lb, Lb), lambda n: (0, 0, 0)),
                pl.BlockSpec((1, 1, Lb), lambda n: (n, 0, 0)),
            ],
            out_specs=pl.BlockSpec((1, Hp, Lb), lambda n: (n, 0, 0)),
            scratch_shapes=[pltpu.VMEM((3, Hp, La), jnp.float32),
                            pltpu.VMEM((3, Hp, Lb), jnp.float32)]),
        compiler_params=pltpu.CompilerParams(
            dimension_semantics=("parallel",)),
    )(xr, w1, b1, w2, b2, w3, b3, w4, b4e)

    # (N, Hp, Wp*Cout) -> NCHW
    return out.reshape(N, Hp, Wp, Cout).transpose(0, 3, 1, 2)


# ---------------------------------------------------------------------------
# Parameters (deterministic, synthetic)
# ---------------------------------------------------------------------------
def fold_bn(w, bn, eps=1e-5):
    gamma, beta, mean, var = bn
    scale = gamma / jnp.sqrt(var + eps)
    return w * scale, beta - mean * scale          # (3,3,ci,co), (co,)


def init_params(key, cin, cout, emb_dim):
    def conv_w(k, ci, co):
        return 0.1 * jax.random.normal(k, (3, 3, ci, co), jnp.float32)

    def bn_params(k, c):
        k1, k2, k3, k4 = jax.random.split(k, 4)
        gamma = 1.0 + 0.1 * jax.random.normal(k1, (c,), jnp.float32)
        beta = 0.1 * jax.random.normal(k2, (c,), jnp.float32)
        mean = 0.1 * jax.random.normal(k3, (c,), jnp.float32)
        var = jax.random.uniform(k4, (c,), jnp.float32, 0.5, 1.5)
        return (gamma, beta, mean, var)

    ks = jax.random.split(key, 10)
    raw = {
        "w1": conv_w(ks[0], cin, cin),   "bn1": bn_params(ks[1], cin),
        "w2": conv_w(ks[2], cin, cin),   "bn2": bn_params(ks[3], cin),
        "w3": conv_w(ks[4], cin, cout),  "bn3": bn_params(ks[5], cout),
        "w4": conv_w(ks[6], cout, cout), "bn4": bn_params(ks[7], cout),
        "wl": 0.1 * jax.random.normal(ks[8], (emb_dim, cout), jnp.float32),
        "bl": 0.1 * jax.random.normal(ks[9], (cout,), jnp.float32),
    }
    folded = {"wl": raw["wl"], "bl": raw["bl"]}
    for i in (1, 2, 3, 4):
        folded[f"w{i}"], folded[f"b{i}"] = fold_bn(raw[f"w{i}"], raw[f"bn{i}"])
    return raw, folded


# ---------------------------------------------------------------------------
# Pure-JAX reference (unfolded BN) for verification
# ---------------------------------------------------------------------------
def ref_forward(x_nchw, t, raw):
    x = jnp.transpose(x_nchw, (0, 2, 3, 1))
    N, H, W, C = x.shape
    xp = x.reshape(N, H // 2, 2, W // 2, 2, C).max(axis=(2, 4))

    def conv(z, w):
        return lax.conv_general_dilated(
            z, w, (1, 1), "SAME", dimension_numbers=("NHWC", "HWIO", "NHWC"))

    def bn(y, stats):
        g, b, m, v = stats
        return (y - m) / jnp.sqrt(v + 1e-5) * g + b

    h1 = jax.nn.relu(bn(conv(xp, raw["w1"]), raw["bn1"]))
    h2 = jax.nn.relu(bn(conv(h1, raw["w2"]), raw["bn2"]) + xp)
    h3 = jax.nn.relu(bn(conv(h2, raw["w3"]), raw["bn3"]))
    h4 = bn(conv(h3, raw["w4"]), raw["bn4"])
    emb = jax.nn.relu(t) @ raw["wl"] + raw["bl"]
    out = h4 + emb[:, None, None, :]
    return jnp.transpose(out, (0, 3, 1, 2))


if __name__ == "__main__":
    N, CIN, COUT, HW, EMB = 2, 4, 8, 16, 32
    key = jax.random.PRNGKey(0)
    kx, kt, kp = jax.random.split(key, 3)
    x = jax.random.normal(kx, (N, CIN, HW, HW), jnp.float32)     # NCHW like PyTorch
    t = jax.random.normal(kt, (N, EMB), jnp.float32)             # time embedding
    raw, folded = init_params(kp, CIN, COUT, EMB)

    out = jax.block_until_ready(down_forward(x, t, folded))
    ref = jax.block_until_ready(ref_forward(x, t, raw))

    assert out.shape == (N, COUT, HW // 2, HW // 2), out.shape
    max_err = float(jnp.max(jnp.abs(out - ref)))
    assert max_err < 3e-2, max_err
    print("KERNEL_OK")
</pallas_src>

<mosaic_0001>
module attributes {stable_mosaic.version = 11 : i64} {
  func.func @_down_kernel(%arg0: i32, %arg1: memref<1x2x2x8x32xf32, #tpu.memory_space<vmem>>, %arg2: memref<3x32x32xf32, #tpu.memory_space<vmem>>, %arg3: memref<1x32xf32, #tpu.memory_space<vmem>>, %arg4: memref<3x32x32xf32, #tpu.memory_space<vmem>>, %arg5: memref<1x32xf32, #tpu.memory_space<vmem>>, %arg6: memref<3x32x64xf32, #tpu.memory_space<vmem>>, %arg7: memref<1x64xf32, #tpu.memory_space<vmem>>, %arg8: memref<3x64x64xf32, #tpu.memory_space<vmem>>, %arg9: memref<1x1x64xf32, #tpu.memory_space<vmem>>, %arg10: memref<1x8x64xf32, #tpu.memory_space<vmem>>, %arg11: memref<3x8x32xf32, #tpu.memory_space<vmem>>, %arg12: memref<3x8x64xf32, #tpu.memory_space<vmem>>) attributes {dimension_semantics = [#tpu.dimension_semantics<parallel>], iteration_bounds = array<i64: 2>, scalar_prefetch = 0 : i64, scratch_operands = 2 : i64, tpu.core_type = #tpu.core_type<tc>, window_params = [{transform_indices = @transform_0, window_bounds = array<i64: 1, 2, 2, 8, 32>}, {pipeline_mode = #tpu.pipeline_mode<synchronous>, transform_indices = @transform_1, window_bounds = array<i64: 3, 32, 32>}, {pipeline_mode = #tpu.pipeline_mode<synchronous>, transform_indices = @transform_2, window_bounds = array<i64: 1, 32>}, {pipeline_mode = #tpu.pipeline_mode<synchronous>, transform_indices = @transform_3, window_bounds = array<i64: 3, 32, 32>}, {pipeline_mode = #tpu.pipeline_mode<synchronous>, transform_indices = @transform_4, window_bounds = array<i64: 1, 32>}, {pipeline_mode = #tpu.pipeline_mode<synchronous>, transform_indices = @transform_5, window_bounds = array<i64: 3, 32, 64>}, {pipeline_mode = #tpu.pipeline_mode<synchronous>, transform_indices = @transform_6, window_bounds = array<i64: 1, 64>}, {pipeline_mode = #tpu.pipeline_mode<synchronous>, transform_indices = @transform_7, window_bounds = array<i64: 3, 64, 64>}, {transform_indices = @transform_8, window_bounds = array<i64: 1, 1, 64>}, {transform_indices = @transform_9, window_bounds = array<i64: 1, 8, 64>}]} {
    %cst = arith.constant 0.000000e+00 : f32
    %0 = vector.broadcast %cst : f32 to vector<8x32xf32>
    %c0 = arith.constant 0 : index
    %c0_0 = arith.constant 0 : index
    %c0_1 = arith.constant 0 : index
    %1 = vector.load %arg11[%c0, %c0_0, %c0_1] : memref<3x8x32xf32, #tpu.memory_space<vmem>>, vector<1x8x32xf32>
    %2 = vector.shape_cast %1 : vector<1x8x32xf32> to vector<8x32xf32>
    %3 = vector.shape_cast %0 : vector<8x32xf32> to vector<1x8x32xf32>
    tpu.vector_store %arg11[%c0, %c0_0, %c0_1], %3 {strides = array<i32>} : memref<3x8x32xf32, #tpu.memory_space<vmem>>, vector<1x8x32xf32>,
    %cst_2 = arith.constant 0.000000e+00 : f32
    %4 = vector.broadcast %cst_2 : f32 to vector<8x32xf32>
    %c2 = arith.constant 2 : index
    %c0_3 = arith.constant 0 : index
    %c0_4 = arith.constant 0 : index
    %5 = vector.load %arg11[%c2, %c0_3, %c0_4] : memref<3x8x32xf32, #tpu.memory_space<vmem>>, vector<1x8x32xf32>
    %6 = vector.shape_cast %5 : vector<1x8x32xf32> to vector<8x32xf32>
    %7 = vector.shape_cast %4 : vector<8x32xf32> to vector<1x8x32xf32>
    tpu.vector_store %arg11[%c2, %c0_3, %c0_4], %7 {strides = array<i32>} : memref<3x8x32xf32, #tpu.memory_space<vmem>>, vector<1x8x32xf32>,
    %cst_5 = arith.constant 0.000000e+00 : f32
    %8 = vector.broadcast %cst_5 : f32 to vector<8x64xf32>
    %c0_6 = arith.constant 0 : index
    %c0_7 = arith.constant 0 : index
    %c0_8 = arith.constant 0 : index
    %9 = vector.load %arg12[%c0_6, %c0_7, %c0_8] : memref<3x8x64xf32, #tpu.memory_space<vmem>>, vector<1x8x64xf32>
    %10 = vector.shape_cast %9 : vector<1x8x64xf32> to vector<8x64xf32>
    %11 = vector.shape_cast %8 : vector<8x64xf32> to vector<1x8x64xf32>
    tpu.vector_store %arg12[%c0_6, %c0_7, %c0_8], %11 {strides = array<i32>} : memref<3x8x64xf32, #tpu.memory_space<vmem>>, vector<1x8x64xf32>,
    %cst_9 = arith.constant 0.000000e+00 : f32
    %12 = vector.broadcast %cst_9 : f32 to vector<8x64xf32>
    %c2_10 = arith.constant 2 : index
    %c0_11 = arith.constant 0 : index
    %c0_12 = arith.constant 0 : index
    %13 = vector.load %arg12[%c2_10, %c0_11, %c0_12] : memref<3x8x64xf32, #tpu.memory_space<vmem>>, vector<1x8x64xf32>
    %14 = vector.shape_cast %13 : vector<1x8x64xf32> to vector<8x64xf32>
    %15 = vector.shape_cast %12 : vector<8x64xf32> to vector<1x8x64xf32>
    tpu.vector_store %arg12[%c2_10, %c0_11, %c0_12], %15 {strides = array<i32>} : memref<3x8x64xf32, #tpu.memory_space<vmem>>, vector<1x8x64xf32>,
    %c0_13 = arith.constant 0 : index
    %c0_14 = arith.constant 0 : index
    %c0_15 = arith.constant 0 : index
    %c0_16 = arith.constant 0 : index
    %c0_17 = arith.constant 0 : index
    %16 = vector.load %arg1[%c0_13, %c0_14, %c0_15, %c0_16, %c0_17] : memref<1x2x2x8x32xf32, #tpu.memory_space<vmem>>, vector<1x1x1x8x32xf32>
    %17 = vector.shape_cast %16 : vector<1x1x1x8x32xf32> to vector<8x32xf32>
    %c0_18 = arith.constant 0 : index
    %c0_19 = arith.constant 0 : index
    %c1 = arith.constant 1 : index
    %c0_20 = arith.constant 0 : index
    %c0_21 = arith.constant 0 : index
    %18 = vector.load %arg1[%c0_18, %c0_19, %c1, %c0_20, %c0_21] : memref<1x2x2x8x32xf32, #tpu.memory_space<vmem>>, vector<1x1x1x8x32xf32>
    %19 = vector.shape_cast %18 : vector<1x1x1x8x32xf32> to vector<8x32xf32>
    %20 = arith.maximumf %17, %19 : vector<8x32xf32>
    %c0_22 = arith.constant 0 : index
    %c1_23 = arith.constant 1 : index
    %c0_24 = arith.constant 0 : index
    %c0_25 = arith.constant 0 : index
    %c0_26 = arith.constant 0 : index
    %21 = vector.load %arg1[%c0_22, %c1_23, %c0_24, %c0_25, %c0_26] : memref<1x2x2x8x32xf32, #tpu.memory_space<vmem>>, vector<1x1x1x8x32xf32>
    %22 = vector.shape_cast %21 : vector<1x1x1x8x32xf32> to vector<8x32xf32>
    %c0_27 = arith.constant 0 : index
    %c1_28 = arith.constant 1 : index
    %c1_29 = arith.constant 1 : index
    %c0_30 = arith.constant 0 : index
    %c0_31 = arith.constant 0 : index
    %23 = vector.load %arg1[%c0_27, %c1_28, %c1_29, %c0_30, %c0_31] : memref<1x2x2x8x32xf32, #tpu.memory_space<vmem>>, vector<1x1x1x8x32xf32>
    %24 = vector.shape_cast %23 : vector<1x1x1x8x32xf32> to vector<8x32xf32>
    %25 = arith.maximumf %22, %24 : vector<8x32xf32>
    %26 = arith.maximumf %20, %25 : vector<8x32xf32>
    %c0_32 = arith.constant 0 : index
    %c0_33 = arith.constant 0 : index
    %27 = vector.load %arg3[%c0_32, %c0_33] : memref<1x32xf32, #tpu.memory_space<vmem>>, vector<1x32xf32>
    %c1_34 = arith.constant 1 : index
    %c0_35 = arith.constant 0 : index
    %c0_36 = arith.constant 0 : index
    %28 = vector.load %arg11[%c1_34, %c0_35, %c0_36] : memref<3x8x32xf32, #tpu.memory_space<vmem>>, vector<1x8x32xf32>
    %29 = vector.shape_cast %28 : vector<1x8x32xf32> to vector<8x32xf32>
    %30 = vector.shape_cast %26 : vector<8x32xf32> to vector<1x8x32xf32>
    tpu.vector_store %arg11[%c1_34, %c0_35, %c0_36], %30 {strides = array<i32>} : memref<3x8x32xf32, #tpu.memory_space<vmem>>, vector<1x8x32xf32>,
    %c0_37 = arith.constant 0 : index
    %c0_38 = arith.constant 0 : index
    %c0_39 = arith.constant 0 : index
    %31 = vector.load %arg11[%c0_37, %c0_38, %c0_39] : memref<3x8x32xf32, #tpu.memory_space<vmem>>, vector<3x8x32xf32>
    %32 = vector.shape_cast %31 : vector<3x8x32xf32> to vector<24x32xf32>
    %33 = vector.extract_strided_slice %32 {offsets = [7, 0], sizes = [8, 32], strides = [1, 1]} : vector<24x32xf32> to vector<8x32xf32>
    %c0_40 = arith.constant 0 : index
    %c0_41 = arith.constant 0 : index
    %c0_42 = arith.constant 0 : index
    %34 = vector.load %arg2[%c0_40, %c0_41, %c0_42] : memref<3x32x32xf32, #tpu.memory_space<vmem>>, vector<1x32x32xf32>
    %35 = vector.shape_cast %34 : vector<1x32x32xf32> to vector<32x32xf32>
    %cst_43 = arith.constant dense<0.000000e+00> : vector<8x32xf32>
    %36 = tpu.matmul %33, %35, %cst_43 {dimension_numbers = #tpu.dot_dimension_numbers<[1], [0], [0], [1], [0, 0, 1, 1], [], []>} : vector<8x32xf32>, vector<32x32xf32>, vector<8x32xf32> -> vector<8x32xf32>
    %37 = vector.extract_strided_slice %32 {offsets = [8, 0], sizes = [8, 32], strides = [1, 1]} : vector<24x32xf32> to vector<8x32xf32>
    %c1_44 = arith.constant 1 : index
    %c0_45 = arith.constant 0 : index
    %c0_46 = arith.constant 0 : index
    %38 = vector.load %arg2[%c1_44, %c0_45, %c0_46] : memref<3x32x32xf32, #tpu.memory_space<vmem>>, vector<1x32x32xf32>
    %39 = vector.shape_cast %38 : vector<1x32x32xf32> to vector<32x32xf32>
    %cst_47 = arith.constant dense<0.000000e+00> : vector<8x32xf32>
    %40 = tpu.matmul %37, %39, %cst_47 {dimension_numbers = #tpu.dot_dimension_numbers<[1], [0], [0], [1], [0, 0, 1, 1], [], []>} : vector<8x32xf32>, vector<32x32xf32>, vector<8x32xf32> -> vector<8x32xf32>
    %41 = arith.addf %36, %40 : vector<8x32xf32>
    %42 = vector.extract_strided_slice %32 {offsets = [9, 0], sizes = [8, 32], strides = [1, 1]} : vector<24x32xf32> to vector<8x32xf32>
    %c2_48 = arith.constant 2 : index
    %c0_49 = arith.constant 0 : index
    %c0_50 = arith.constant 0 : index
    %43 = vector.load %arg2[%c2_48, %c0_49, %c0_50] : memref<3x32x32xf32, #tpu.memory_space<vmem>>, vector<1x32x32xf32>
    %44 = vector.shape_cast %43 : vector<1x32x32xf32> to vector<32x32xf32>
    %cst_51 = arith.constant dense<0.000000e+00> : vector<8x32xf32>
    %45 = tpu.matmul %42, %44, %cst_51 {dimension_numbers = #tpu.dot_dimension_numbers<[1], [0], [0], [1], [0, 0, 1, 1], [], []>} : vector<8x32xf32>, vector<32x32xf32>, vector<8x32xf32> -> vector<8x32xf32>
    %46 = arith.addf %41, %45 : vector<8x32xf32>
    %47 = vector.broadcast %27 : vector<1x32xf32> to vector<8x32xf32>
    %48 = arith.addf %46, %47 : vector<8x32xf32>
    %cst_52 = arith.constant 0.000000e+00 : f32
    %49 = vector.broadcast %cst_52 : f32 to vector<8x32xf32>
    %50 = arith.maximumf %48, %49 : vector<8x32xf32>
    %c0_53 = arith.constant 0 : index
    %c0_54 = arith.constant 0 : index
    %51 = vector.load %arg5[%c0_53, %c0_54] : memref<1x32xf32, #tpu.memory_space<vmem>>, vector<1x32xf32>
    %c1_55 = arith.constant 1 : index
    %c0_56 = arith.constant 0 : index
    %c0_57 = arith.constant 0 : index
    %52 = vector.load %arg11[%c1_55, %c0_56, %c0_57] : memref<3x8x32xf32, #tpu.memory_space<vmem>>, vector<1x8x32xf32>
    %53 = vector.shape_cast %52 : vector<1x8x32xf32> to vector<8x32xf32>
    %54 = vector.shape_cast %50 : vector<8x32xf32> to vector<1x8x32xf32>
    tpu.vector_store %arg11[%c1_55, %c0_56, %c0_57], %54 {strides = array<i32>} : memref<3x8x32xf32, #tpu.memory_space<vmem>>, vector<1x8x32xf32>,
    %c0_58 = arith.constant 0 : index
    %c0_59 = arith.constant 0 : index
    %c0_60 = arith.constant 0 : index
    %55 = vector.load %arg11[%c0_58, %c0_59, %c0_60] : memref<3x8x32xf32, #tpu.memory_space<vmem>>, vector<3x8x32xf32>
    %56 = vector.shape_cast %55 : vector<3x8x32xf32> to vector<24x32xf32>
    %57 = vector.extract_strided_slice %56 {offsets = [7, 0], sizes = [8, 32], strides = [1, 1]} : vector<24x32xf32> to vector<8x32xf32>
    %c0_61 = arith.constant 0 : index
    %c0_62 = arith.constant 0 : index
    %c0_63 = arith.constant 0 : index
    %58 = vector.load %arg4[%c0_61, %c0_62, %c0_63] : memref<3x32x32xf32, #tpu.memory_space<vmem>>, vector<1x32x32xf32>
    %59 = vector.shape_cast %58 : vector<1x32x32xf32> to vector<32x32xf32>
    %cst_64 = arith.constant dense<0.000000e+00> : vector<8x32xf32>
    %60 = tpu.matmul %57, %59, %cst_64 {dimension_numbers = #tpu.dot_dimension_numbers<[1], [0], [0], [1], [0, 0, 1, 1], [], []>} : vector<8x32xf32>, vector<32x32xf32>, vector<8x32xf32> -> vector<8x32xf32>
    %61 = vector.extract_strided_slice %56 {offsets = [8, 0], sizes = [8, 32], strides = [1, 1]} : vector<24x32xf32> to vector<8x32xf32>
    %c1_65 = arith.constant 1 : index
    %c0_66 = arith.constant 0 : index
    %c0_67 = arith.constant 0 : index
    %62 = vector.load %arg4[%c1_65, %c0_66, %c0_67] : memref<3x32x32xf32, #tpu.memory_space<vmem>>, vector<1x32x32xf32>
    %63 = vector.shape_cast %62 : vector<1x32x32xf32> to vector<32x32xf32>
    %cst_68 = arith.constant dense<0.000000e+00> : vector<8x32xf32>
    %64 = tpu.matmul %61, %63, %cst_68 {dimension_numbers = #tpu.dot_dimension_numbers<[1], [0], [0], [1], [0, 0, 1, 1], [], []>} : vector<8x32xf32>, vector<32x32xf32>, vector<8x32xf32> -> vector<8x32xf32>
    %65 = arith.addf %60, %64 : vector<8x32xf32>
    %66 = vector.extract_strided_slice %56 {offsets = [9, 0], sizes = [8, 32], strides = [1, 1]} : vector<24x32xf32> to vector<8x32xf32>
    %c2_69 = arith.constant 2 : index
    %c0_70 = arith.constant 0 : index
    %c0_71 = arith.constant 0 : index
    %67 = vector.load %arg4[%c2_69, %c0_70, %c0_71] : memref<3x32x32xf32, #tpu.memory_space<vmem>>, vector<1x32x32xf32>
    %68 = vector.shape_cast %67 : vector<1x32x32xf32> to vector<32x32xf32>
    %cst_72 = arith.constant dense<0.000000e+00> : vector<8x32xf32>
    %69 = tpu.matmul %66, %68, %cst_72 {dimension_numbers = #tpu.dot_dimension_numbers<[1], [0], [0], [1], [0, 0, 1, 1], [], []>} : vector<8x32xf32>, vector<32x32xf32>, vector<8x32xf32> -> vector<8x32xf32>
    %70 = arith.addf %65, %69 : vector<8x32xf32>
    %71 = vector.broadcast %51 : vector<1x32xf32> to vector<8x32xf32>
    %72 = arith.addf %70, %71 : vector<8x32xf32>
    %73 = arith.addf %72, %26 : vector<8x32xf32>
    %cst_73 = arith.constant 0.000000e+00 : f32
    %74 = vector.broadcast %cst_73 : f32 to vector<8x32xf32>
    %75 = arith.maximumf %73, %74 : vector<8x32xf32>
    %c0_74 = arith.constant 0 : index
    %c0_75 = arith.constant 0 : index
    %76 = vector.load %arg7[%c0_74, %c0_75] : memref<1x64xf32, #tpu.memory_space<vmem>>, vector<1x64xf32>
    %c1_76 = arith.constant 1 : index
    %c0_77 = arith.constant 0 : index
    %c0_78 = arith.constant 0 : index
    %77 = vector.load %arg11[%c1_76, %c0_77, %c0_78] : memref<3x8x32xf32, #tpu.memory_space<vmem>>, vector<1x8x32xf32>
    %78 = vector.shape_cast %77 : vector<1x8x32xf32> to vector<8x32xf32>
    %79 = vector.shape_cast %75 : vector<8x32xf32> to vector<1x8x32xf32>
    tpu.vector_store %arg11[%c1_76, %c0_77, %c0_78], %79 {strides = array<i32>} : memref<3x8x32xf32, #tpu.memory_space<vmem>>, vector<1x8x32xf32>,
    %c0_79 = arith.constant 0 : index
    %c0_80 = arith.constant 0 : index
    %c0_81 = arith.constant 0 : index
    %80 = vector.load %arg11[%c0_79, %c0_80, %c0_81] : memref<3x8x32xf32, #tpu.memory_space<vmem>>, vector<3x8x32xf32>
    %81 = vector.shape_cast %80 : vector<3x8x32xf32> to vector<24x32xf32>
    %82 = vector.extract_strided_slice %81 {offsets = [7, 0], sizes = [8, 32], strides = [1, 1]} : vector<24x32xf32> to vector<8x32xf32>
    %c0_82 = arith.constant 0 : index
    %c0_83 = arith.constant 0 : index
    %c0_84 = arith.constant 0 : index
    %83 = vector.load %arg6[%c0_82, %c0_83, %c0_84] : memref<3x32x64xf32, #tpu.memory_space<vmem>>, vector<1x32x64xf32>
    %84 = vector.shape_cast %83 : vector<1x32x64xf32> to vector<32x64xf32>
    %cst_85 = arith.constant dense<0.000000e+00> : vector<8x64xf32>
    %85 = tpu.matmul %82, %84, %cst_85 {dimension_numbers = #tpu.dot_dimension_numbers<[1], [0], [0], [1], [0, 0, 1, 1], [], []>} : vector<8x32xf32>, vector<32x64xf32>, vector<8x64xf32> -> vector<8x64xf32>
    %86 = vector.extract_strided_slice %81 {offsets = [8, 0], sizes = [8, 32], strides = [1, 1]} : vector<24x32xf32> to vector<8x32xf32>
    %c1_86 = arith.constant 1 : index
    %c0_87 = arith.constant 0 : index
    %c0_88 = arith.constant 0 : index
    %87 = vector.load %arg6[%c1_86, %c0_87, %c0_88] : memref<3x32x64xf32, #tpu.memory_space<vmem>>, vector<1x32x64xf32>
    %88 = vector.shape_cast %87 : vector<1x32x64xf32> to vector<32x64xf32>
    %cst_89 = arith.constant dense<0.000000e+00> : vector<8x64xf32>
    %89 = tpu.matmul %86, %88, %cst_89 {dimension_numbers = #tpu.dot_dimension_numbers<[1], [0], [0], [1], [0, 0, 1, 1], [], []>} : vector<8x32xf32>, vector<32x64xf32>, vector<8x64xf32> -> vector<8x64xf32>
    %90 = arith.addf %85, %89 : vector<8x64xf32>
    %91 = vector.extract_strided_slice %81 {offsets = [9, 0], sizes = [8, 32], strides = [1, 1]} : vector<24x32xf32> to vector<8x32xf32>
    %c2_90 = arith.constant 2 : index
    %c0_91 = arith.constant 0 : index
    %c0_92 = arith.constant 0 : index
    %92 = vector.load %arg6[%c2_90, %c0_91, %c0_92] : memref<3x32x64xf32, #tpu.memory_space<vmem>>, vector<1x32x64xf32>
    %93 = vector.shape_cast %92 : vector<1x32x64xf32> to vector<32x64xf32>
    %cst_93 = arith.constant dense<0.000000e+00> : vector<8x64xf32>
    %94 = tpu.matmul %91, %93, %cst_93 {dimension_numbers = #tpu.dot_dimension_numbers<[1], [0], [0], [1], [0, 0, 1, 1], [], []>} : vector<8x32xf32>, vector<32x64xf32>, vector<8x64xf32> -> vector<8x64xf32>
    %95 = arith.addf %90, %94 : vector<8x64xf32>
    %96 = vector.broadcast %76 : vector<1x64xf32> to vector<8x64xf32>
    %97 = arith.addf %95, %96 : vector<8x64xf32>
    %cst_94 = arith.constant 0.000000e+00 : f32
    %98 = vector.broadcast %cst_94 : f32 to vector<8x64xf32>
    %99 = arith.maximumf %97, %98 : vector<8x64xf32>
    %c0_95 = arith.constant 0 : index
    %c0_96 = arith.constant 0 : index
    %c0_97 = arith.constant 0 : index
    %100 = vector.load %arg9[%c0_95, %c0_96, %c0_97] : memref<1x1x64xf32, #tpu.memory_space<vmem>>, vector<1x1x64xf32>
    %101 = vector.shape_cast %100 : vector<1x1x64xf32> to vector<1x64xf32>
    %c1_98 = arith.constant 1 : index
    %c0_99 = arith.constant 0 : index
    %c0_100 = arith.constant 0 : index
    %102 = vector.load %arg12[%c1_98, %c0_99, %c0_100] : memref<3x8x64xf32, #tpu.memory_space<vmem>>, vector<1x8x64xf32>
    %103 = vector.shape_cast %102 : vector<1x8x64xf32> to vector<8x64xf32>
    %104 = vector.shape_cast %99 : vector<8x64xf32> to vector<1x8x64xf32>
    tpu.vector_store %arg12[%c1_98, %c0_99, %c0_100], %104 {strides = array<i32>} : memref<3x8x64xf32, #tpu.memory_space<vmem>>, vector<1x8x64xf32>,
    %c0_101 = arith.constant 0 : index
    %c0_102 = arith.constant 0 : index
    %c0_103 = arith.constant 0 : index
    %105 = vector.load %arg12[%c0_101, %c0_102, %c0_103] : memref<3x8x64xf32, #tpu.memory_space<vmem>>, vector<3x8x64xf32>
    %106 = vector.shape_cast %105 : vector<3x8x64xf32> to vector<24x64xf32>
    %107 = vector.extract_strided_slice %106 {offsets = [7, 0], sizes = [8, 64], strides = [1, 1]} : vector<24x64xf32> to vector<8x64xf32>
    %c0_104 = arith.constant 0 : index
    %c0_105 = arith.constant 0 : index
    %c0_106 = arith.constant 0 : index
    %108 = vector.load %arg8[%c0_104, %c0_105, %c0_106] : memref<3x64x64xf32, #tpu.memory_space<vmem>>, vector<1x64x64xf32>
    %109 = vector.shape_cast %108 : vector<1x64x64xf32> to vector<64x64xf32>
    %cst_107 = arith.constant dense<0.000000e+00> : vector<8x64xf32>
    %110 = tpu.matmul %107, %109, %cst_107 {dimension_numbers = #tpu.dot_dimension_numbers<[1], [0], [0], [1], [0, 0, 1, 1], [], []>} : vector<8x64xf32>, vector<64x64xf32>, vector<8x64xf32> -> vector<8x64xf32>
    %111 = vector.extract_strided_slice %106 {offsets = [8, 0], sizes = [8, 64], strides = [1, 1]} : vector<24x64xf32> to vector<8x64xf32>
    %c1_108 = arith.constant 1 : index
    %c0_109 = arith.constant 0 : index
    %c0_110 = arith.constant 0 : index
    %112 = vector.load %arg8[%c1_108, %c0_109, %c0_110] : memref<3x64x64xf32, #tpu.memory_space<vmem>>, vector<1x64x64xf32>
    %113 = vector.shape_cast %112 : vector<1x64x64xf32> to vector<64x64xf32>
    %cst_111 = arith.constant dense<0.000000e+00> : vector<8x64xf32>
    %114 = tpu.matmul %111, %113, %cst_111 {dimension_numbers = #tpu.dot_dimension_numbers<[1], [0], [0], [1], [0, 0, 1, 1], [], []>} : vector<8x64xf32>, vector<64x64xf32>, vector<8x64xf32> -> vector<8x64xf32>
    %115 = arith.addf %110, %114 : vector<8x64xf32>
    %116 = vector.extract_strided_slice %106 {offsets = [9, 0], sizes = [8, 64], strides = [1, 1]} : vector<24x64xf32> to vector<8x64xf32>
    %c2_112 = arith.constant 2 : index
    %c0_113 = arith.constant 0 : index
    %c0_114 = arith.constant 0 : index
    %117 = vector.load %arg8[%c2_112, %c0_113, %c0_114] : memref<3x64x64xf32, #tpu.memory_space<vmem>>, vector<1x64x64xf32>
    %118 = vector.shape_cast %117 : vector<1x64x64xf32> to vector<64x64xf32>
    %cst_115 = arith.constant dense<0.000000e+00> : vector<8x64xf32>
    %119 = tpu.matmul %116, %118, %cst_115 {dimension_numbers = #tpu.dot_dimension_numbers<[1], [0], [0], [1], [0, 0, 1, 1], [], []>} : vector<8x64xf32>, vector<64x64xf32>, vector<8x64xf32> -> vector<8x64xf32>
    %120 = arith.addf %115, %119 : vector<8x64xf32>
    %121 = vector.broadcast %101 : vector<1x64xf32> to vector<8x64xf32>
    %122 = arith.addf %120, %121 : vector<8x64xf32>
    %c0_116 = arith.constant 0 : index
    %c0_117 = arith.constant 0 : index
    %c0_118 = arith.constant 0 : index
    %123 = vector.load %arg10[%c0_116, %c0_117, %c0_118] : memref<1x8x64xf32, #tpu.memory_space<vmem>>, vector<1x8x64xf32>
    %124 = vector.shape_cast %123 : vector<1x8x64xf32> to vector<8x64xf32>
    %125 = vector.shape_cast %122 : vector<8x64xf32> to vector<1x8x64xf32>
    tpu.vector_store %arg10[%c0_116, %c0_117, %c0_118], %125 {strides = array<i32>} : memref<1x8x64xf32, #tpu.memory_space<vmem>>, vector<1x8x64xf32>,
    return
  }
  func.func @transform_0(%arg0: i32) -> (i32, i32, i32, i32, i32) {
    %c0_i32 = arith.constant 0 : i32
    %c0_i32_0 = arith.constant 0 : i32
    %c0_i32_1 = arith.constant 0 : i32
    %c0_i32_2 = arith.constant 0 : i32
    %c0_i32_3 = arith.constant 0 : i32
    return %arg0, %c0_i32, %c0_i32_0, %c0_i32_1, %c0_i32_2 : i32, i32, i32, i32, i32
  }
  func.func @transform_1(%arg0: i32) -> (i32, i32, i32) {
    %c0_i32 = arith.constant 0 : i32
    %c0_i32_0 = arith.constant 0 : i32
    %c0_i32_1 = arith.constant 0 : i32
    %c0_i32_2 = arith.constant 0 : i32
    return %c0_i32, %c0_i32_0, %c0_i32_1 : i32, i32, i32
  }
  func.func @transform_2(%arg0: i32) -> (i32, i32) {
    %c0_i32 = arith.constant 0 : i32
    %c0_i32_0 = arith.constant 0 : i32
    %c0_i32_1 = arith.constant 0 : i32
    return %c0_i32, %c0_i32_0 : i32, i32
  }
  func.func @transform_3(%arg0: i32) -> (i32, i32, i32) {
    %c0_i32 = arith.constant 0 : i32
    %c0_i32_0 = arith.constant 0 : i32
    %c0_i32_1 = arith.constant 0 : i32
    %c0_i32_2 = arith.constant 0 : i32
    return %c0_i32, %c0_i32_0, %c0_i32_1 : i32, i32, i32
  }
  func.func @transform_4(%arg0: i32) -> (i32, i32) {
    %c0_i32 = arith.constant 0 : i32
    %c0_i32_0 = arith.constant 0 : i32
    %c0_i32_1 = arith.constant 0 : i32
    return %c0_i32, %c0_i32_0 : i32, i32
  }
  func.func @transform_5(%arg0: i32) -> (i32, i32, i32) {
    %c0_i32 = arith.constant 0 : i32
    %c0_i32_0 = arith.constant 0 : i32
    %c0_i32_1 = arith.constant 0 : i32
    %c0_i32_2 = arith.constant 0 : i32
    return %c0_i32, %c0_i32_0, %c0_i32_1 : i32, i32, i32
  }
  func.func @transform_6(%arg0: i32) -> (i32, i32) {
    %c0_i32 = arith.constant 0 : i32
    %c0_i32_0 = arith.constant 0 : i32
    %c0_i32_1 = arith.constant 0 : i32
    return %c0_i32, %c0_i32_0 : i32, i32
  }
  func.func @transform_7(%arg0: i32) -> (i32, i32, i32) {
    %c0_i32 = arith.constant 0 : i32
    %c0_i32_0 = arith.constant 0 : i32
    %c0_i32_1 = arith.constant 0 : i32
    %c0_i32_2 = arith.constant 0 : i32
    return %c0_i32, %c0_i32_0, %c0_i32_1 : i32, i32, i32
  }
  func.func @transform_8(%arg0: i32) -> (i32, i32, i32) {
    %c0_i32 = arith.constant 0 : i32
    %c0_i32_0 = arith.constant 0 : i32
    %c0_i32_1 = arith.constant 0 : i32
    return %arg0, %c0_i32, %c0_i32_0 : i32, i32, i32
  }
  func.func @transform_9(%arg0: i32) -> (i32, i32, i32) {
    %c0_i32 = arith.constant 0 : i32
    %c0_i32_0 = arith.constant 0 : i32
    %c0_i32_1 = arith.constant 0 : i32
    return %arg0, %c0_i32, %c0_i32_0 : i32, i32, i32
  }
}

</mosaic_0001>

<bundles_post_ra>
// kernel: tpu_custom_call.1
= control target key start
LH: loop header
LB: loop body
LE: loop exit
PB: predicated region body
PF: predicated region fallthrough
CT: control target
= control target key end

     0   :  { %s2582_s0 = inlined_call_operand.hbm [shape: f32[2,2,2,8,32], index: 0, kind: input, shape index: {}]   ;;  %s2583_s1 = inlined_call_operand.hbm [shape: f32[3,32,32], index: 1, kind: input, shape index: {}]   ;;  %s2584_s2 = inlined_call_operand.vmem [shape: f32[1,32], index: 2, kind: input, shape index: {}]   ;;  %s2585_s3 = inlined_call_operand.hbm [shape: f32[3,32,32], index: 3, kind: input, shape index: {}]   ;;  %s2586_s4 = inlined_call_operand.vmem [shape: f32[1,32], index: 4, kind: input, shape index: {}]   ;;  %s2587_s5 = inlined_call_operand.hbm [shape: f32[3,32,64], index: 5, kind: input, shape index: {}]   ;;  %s2588_s6 = inlined_call_operand.vmem [shape: f32[1,64], index: 6, kind: input, shape index: {}]   ;;  %s2589_s7 = inlined_call_operand.hbm [shape: f32[3,64,64], index: 7, kind: input, shape index: {}]   ;;  %s2590_s8 = inlined_call_operand.vmem [shape: f32[2,1,64], index: 8, kind: input, shape index: {}]   ;;  %s2591_s9 = inlined_call_operand.hbm [shape: f32[2,8,64], index: 9, kind: output, shape index: {}]  }
   0x1   :  { %2598 = sst [smem:[#allocation18_spill]] %s2583_s1 }
   0x2   :  { %2599 = sst [smem:[#allocation19_spill]] %s2585_s3 }
   0x3   :  { %2600 = sst [smem:[#allocation20_spill]] %s2587_s5 }
   0x4   :  { %14 = vsyncpa [#allocation5], 0 }
   0x5   :  { %16 = vsyncpa [#allocation5 + $0x1], 0 }
   0x6   :  { %17 = vsyncpa [#allocation8], 0 }
   0x7   :  { %18 = vsyncpa [#allocation11], 0 }
   0x8   :  { %19 = vsyncpa [#allocation6], 0 }
   0x9   :  { %21 = vsyncpa [#allocation6 + $0x1], 0  ;;  %s2227_s30 = smov 0   ;;  %s2229_s10 = smov 0  }
   0xa   :  { %s2231_s11 = smov 0   ;;  %s2233_s12 = smov 0  }
   0xb LB: > { %s2248_s13 = sadd.s32 4294967295, %s2165_s12   ;;  %s1601_s14 = sadd.s32 4294967294, %s2165_s12   ;;  %s2165_s12 = sphi %s2233_s12, %s2624_s12   ;;  %s2161_s11 = sphi %s2231_s11, %s2623_s11   ;;  %s2157_s10 = sphi %s2229_s10, %s2622_s10   ;;  %s2153_s30 = sphi %s2227_s30, %s2621_s30  }
   0xc   : > { %p47_p0 = scmp.ne.s32.totalorder %s2157_s10, %s2153_s30  ;;  %p2592_p1 = scmp.eq.s32.totalorder %s2248_s13, 0 }
   0xd   : > { %p244_p2 = scmp.eq.s32.totalorder %s2248_s13, 1  ;;  %p250_p3 = scmp.eq.s32.totalorder %s1601_s14, 1 }
   0xe   : > { %p2257_p4 = por %p2592_p1, %p47_p0  ;;  %p1602_p5 = scmp.ge.s32.totalorder %s2165_s12, 1 }
   0xf   : > { %p2262_p6 = por %p250_p3, %p47_p0  ;;  %p257_p7 = scmp.lt.s32.totalorder %s2165_s12, 3 }
  0x10   : > { %s2601_s15 = scalar_select %p2257_p4, 1, 0 }
  0x11   : > { %s2602_s16 = scalar_select %p2262_p6, 1, 0 }
  0x12   : > { %p2267_p8 = pnand %p1602_p5, %p257_p7  ;;  %s2167_s18 = smov [#allocation7]  }
  0x13   : > { %s269_s19 = sshll.u32 %s2167_s18, 4  ;;  %s2168_s21 = smov [#allocation10]   ;;  %s270_s19 = int_to_ptr.vmem [resolvable:$true] %s269_s19 }
  0x14   : > { %s2603_s17 = scalar_select %p2267_p8, 1, 0 }
  0x15   : > { %p1890_p9 = pneg %p2267_p8  ;;  %s301_s22 = sshll.u32 %s2168_s21, 4  ;;  %s302_s22 = int_to_ptr.vmem [resolvable:$true] %s301_s22 }
  0x16   : > { %s2169_s23 = smov [#allocation9]   ;;  %s1972_s25 = scalar_lea.vmem %s270_s19, 1536 }
  0x17   : > { %p2276_p11 = pnand %p1890_p9, %p2592_p1  ;;  %s285_s24 = sshll.u32 %s2169_s23, 4  ;;  %s286_s24 = int_to_ptr.vmem [resolvable:$true] %s285_s24 }
  0x18   : > { %p1973_p13 = scmp.ne.s32.totalorder %s270_s19, %s1972_s25  ;;  %p1980_p5 = scmp.lt.s32.totalorder %s270_s19, %s270_s19 }
  0x19   : > { %p1963_p12 = pneg %p2276_p11  ;;  %p1981_p7 = scmp.lt.s32.totalorder %s1972_s25, %s1972_s25 }
  0x1b   : > { %p1975_p0 = pnand %p1973_p13, %p1963_p12  ;;  %p1982_p9 = por %p1981_p7, %p1980_p5 }
  0x1d   : > { %p1976_p3 = pneg %p1975_p0 }
  0x1f   : > { %p1983_p10 = pnand %p1982_p9, %p1976_p3 }
  0x21   : > { %1986 = shalt.err (!%p1983_p10)
}
  0x22   : > { %s2593_s26 = smov 128   ;;  %s2594_s27 = smov 8  }
  0x23   : > { %s2605_s1 = sld [smem:[#allocation18_spill]]  ;;  %s1998_s14 = scalar_lea.vmem %s302_s22, 1536 }
  0x24   : > { %p1999_p13 = scmp.ne.s32.totalorder %s302_s22, %s1998_s14  ;;  %p2006_p3 = scmp.lt.s32.totalorder %s302_s22, %s302_s22 }
  0x25   : > { %p2007_p10 = scmp.lt.s32.totalorder %s1998_s14, %s1998_s14 }
  0x26   : > { %p2001_p0 = pnand %p1999_p13, %p1963_p12 }
  0x27   : > { %p2008_p7 = por %p2007_p10, %p2006_p3 }
  0x28   : > { %p2002_p5 = pneg %p2001_p0 }
  0x29   : > { %1893 = dma.hbm_to_vmem [thread:$0]  (!%p2276_p11), %s2605_s1, 1536, %s270_s19, [#allocation8], %s2593_s26, %s2593_s26, %s2594_s27  }
  0x2a   : > { %p2009_p9 = pnand %p2008_p7, %p2002_p5 }
  0x2c   : > { %2012 = shalt.err (!%p2009_p9)
}
  0x2d   : > { %s2606_s5 = sld [smem:[#allocation20_spill]]  ;;  %s2024_s19 = scalar_lea.vmem %s286_s24, 1536 }
  0x2e   : > { %p2025_p1 = scmp.ne.s32.totalorder %s286_s24, %s2024_s19  ;;  %p2032_p3 = scmp.lt.s32.totalorder %s286_s24, %s286_s24 }
  0x2f   : > { %p2033_p5 = scmp.lt.s32.totalorder %s2024_s19, %s2024_s19 }
  0x30   : > { %p2027_p13 = pnand %p2025_p1, %p1963_p12 }
  0x31   : > { %p2034_p10 = por %p2033_p5, %p2032_p3 }
  0x32   : > { %p2028_p0 = pneg %p2027_p13 }
  0x33   : > { %1899 = dma.hbm_to_vmem [thread:$0]  (!%p2276_p11), %s2606_s5, 1536, %s302_s22, [#allocation11], %s2593_s26, %s2593_s26, %s2594_s27  }
  0x34   : > { %p2035_p7 = pnand %p2034_p10, %p2028_p0 }
  0x36   : > { %2038 = shalt.err (!%p2035_p7)
}
  0x37   : > { %s2607_s3 = sld [smem:[#allocation19_spill]]  ;;  %s2172_s22 = smov [#allocation12]  }
  0x38   : > { %s317_s28 = sshll.u32 %s2172_s22, 4  ;;  %s318_s28 = int_to_ptr.vmem [resolvable:$true] %s317_s28 }
  0x39   : > { %s2050_s29 = scalar_lea.vmem %s318_s28, 3072  ;;  %p2058_p0 = scmp.lt.s32.totalorder %s318_s28, %s318_s28 }
  0x3a   : > { %p2051_p1 = scmp.ne.s32.totalorder %s318_s28, %s2050_s29  ;;  %p2059_p3 = scmp.lt.s32.totalorder %s2050_s29, %s2050_s29 }
  0x3c   : > { %p2053_p9 = pnand %p2051_p1, %p1963_p12  ;;  %p2060_p5 = por %p2059_p3, %p2058_p0 }
  0x3d   : > { %1896 = dma.hbm_to_vmem [thread:$0]  (!%p2276_p11), %s2607_s3, 1536, %s286_s24, [#allocation8], %s2593_s26, %s2593_s26, %s2594_s27  }
  0x3e   : > { %p2054_p13 = pneg %p2053_p9 }
  0x40   : > { %p2061_p10 = pnand %p2060_p5, %p2054_p13 }
  0x42   : > { %2064 = shalt.err (!%p2061_p10)
}
  0x43   : > { %1902 = dma.hbm_to_vmem [thread:$0]  (!%p2276_p11), %s2589_s7, 3072, %s318_s28, [#allocation11], %s2593_s26, %s2593_s26, %s2594_s27  }
  0x44   : > { %s2327_s18 = sadd.s32 1, %s2165_s12   ;;  %s34_s20 = sadd.s32 1, %s2161_s11 }
  0x45   : > { %s31_s21 = ssub.s32 %s2165_s12, %s2327_s18  ;;  %p41_p12 = scmp.ne.s32.totalorder %s2161_s11, %s2157_s10 }
  0x46   : > { %p32_p7 = scmp.eq.s32.totalorder %s31_s21, 0  ;;  %p42_p1 = scmp.eq.s32.totalorder %s2165_s12, 0 }
  0x47   : > { %p2337_p9 = por %p244_p2, %p41_p12  ;;  %p1915_p13 = scmp.lt.s32.totalorder %s2165_s12, 2 }
  0x48   : > { %s2343_s23 = scalar_select %p32_p7, %s2161_s11, %s34_s20  }
  0x49   : > { %s2608_s19 = scalar_select %p2337_p9, 1, 0 }
  0x4a   : > { %p43_p0 = por %p42_p1, %p41_p12  ;;  %s331_s25 = sand.u32 1, %s2161_s11  }
  0x4b   : > { %s1608_s22 = sshll.u32 %s331_s25, 5  ;;  %s1641_s28 = sshll.u32 %s2165_s12, 9 }
  0x4c   : > { %s2350_s14 = scalar_lea.hbm %s2582_s0, %s1641_s28  ;;  %s335_s21 = scalar_lea.vmem [#allocation4], %s1608_s22 }
  0x4d   : > { %s342_s26 = sshll.u32 %s335_s21, 4  ;;  %p2354_p2 = pnand %p1915_p13, %p43_p0  ;;  %s2352_s26 = int_to_ptr.vmem [resolvable:$true] %s342_s26 }
  0x4e   : > { %s2358_s20 = scalar_lea.sflag [#allocation5], %s331_s25  ;;  %s2065_s1 = scalar_lea.hbm %s2350_s14, 512 }
  0x4f   : > { %p2066_p11 = scmp.ne.s32.totalorder %s2350_s14, %s2065_s1  ;;  %p2067_p3 = pneg %p2354_p2 }
  0x50   : > { %s2070_s22 = scalar_lea.hbm %s2582_s0, 1024  ;;  %p2071_p12 = scmp.lt.s32.totalorder %s2350_s14, %s2582_s0 }
  0x51   : > { %p2068_p5 = pnand %p2067_p3, %p2066_p11  ;;  %p2072_p7 = scmp.lt.s32.totalorder %s2070_s22, %s2065_s1 }
  0x53   : > { %p2069_p10 = pneg %p2068_p5  ;;  %p2073_p1 = por %p2072_p7, %p2071_p12 }
  0x55   : > { %p2074_p13 = pnand %p2073_p1, %p2069_p10 }
  0x57   : > { %2077 = shalt.err (!%p2074_p13)
}
  0x58   : > { %s2078_s25 = scalar_lea.vmem %s2352_s26, 512  ;;  %s2173_s3 = smov [#allocation4]  }
  0x59   : > { %p2079_p0 = scmp.ne.s32.totalorder %s2352_s26, %s2078_s25  ;;  %s2083_s5 = sshll.u32 %s2173_s3, 4  ;;  %s2084_s5 = int_to_ptr.vmem [resolvable:$false] %s2083_s5 }
  0x5a   : > { %s2085_s28 = scalar_lea.vmem %s2084_s5, 1024  ;;  %p2086_p5 = scmp.lt.s32.totalorder %s2352_s26, %s2084_s5 }
  0x5b   : > { %p2081_p6 = pnand %p2079_p0, %p2067_p3  ;;  %p2087_p9 = scmp.lt.s32.totalorder %s2085_s28, %s2078_s25 }
  0x5d   : > { %p2082_p11 = pneg %p2081_p6  ;;  %p2088_p4 = por %p2087_p9, %p2086_p5 }
  0x5f   : > { %p2089_p8 = pnand %p2088_p4, %p2082_p11 }
  0x61   : > { %2092 = shalt.err (!%p2089_p8)
}
  0x62   : > { %s2610_s1 = smov 8   ;;  %s2611_s29 = smov 128  }
  0x63   : > { %1906 = dma.hbm_to_vmem [thread:$0]  (!%p2354_p2), %s2350_s14, 512, %s2352_s26, %s2358_s20, %s2611_s29, %s2611_s29, %s2610_s1  }
  0x64   : > { %p2612_p6 = scmp.ne.s32.totalorder %s2603_s17, 0 }
  0x65   : > { %s2385_s3 = sand.u32 (!%p2612_p6), 1, %s2157_s10   ;;  %p2613_p4 = scmp.ne.s32.totalorder (!%p2612_p6), %s2601_s15, 0 }
  0x66   : > { %360 = sbr.rel (%p2612_p6) target bundleno = 1003 (0x3eb), region = 56  ;;  %s1612_s5 = sshll.u32 (!%p2612_p6), %s2385_s3, 5 }
  0x67   : > { %s363_s22 = scalar_lea.sflag (!%p2612_p6), [#allocation5], %s2385_s3  ;;  %s366_s24 = scalar_lea.vmem (!%p2612_p6), [#allocation4], %s1612_s5 }
  0x6b   : > { %2136 = dma.done.wait (%p2613_p4), %s363_s22, 512  }
  0x6c   : > { %2138 = vsyncadd (%p2613_p4), %s363_s22, 4294966784  ;;  %p2614_p8 = scmp.eq.s32.totalorder %s2248_s13, 0 }
  0x6e   : > { %2140 = dma.done.wait (%p2614_p8), [#allocation8], 3072   ;;  %p2615_p9 = pmov %p2614_p8 }
  0x6f   : > { %p2616_p2 = pmov %p2614_p8 }
  0x70   : > { %2142 = vsyncadd (%p2615_p9), [#allocation8], 4294964224 }
  0x71   : > { %2144 = dma.done.wait (%p2616_p2), [#allocation11], 4608   ;;  %p2617_p3 = pmov %p2616_p2 }
  0x72   : > { %vm423_vm0 = vcmask 261120   ;;  %v2174_v0 = vmov 0.0   ;;  %vm2175_vm1 = vmmov 0   ;;  %v455_v1 = vld [vmem:[#allocation7 + $0x38] sm:$0xff]  ;;  %v454_v2 = vld [vmem:[#allocation7 + $0x30] sm:$0xff]  ;;  %v453_v3 = vld [vmem:[#allocation7 + $0x28] sm:$0xff] }
  0x73   : > { %2146 = vsyncadd (%p2617_p3), [#allocation11], 4294962688  ;;  %1714 = vmatprep.subr.mxu0 %v2174_v0  ;;  %1725 = vmatprep.subr.mxu1 %v2174_v0  ;;  %424 = vst.msk [vmem:[#allocation2] sm:$0xff] %vm423_vm0, %v2174_v0  ;;  %v450_v4 = vld [vmem:[#allocation7 + $0x18] sm:$0xff]  ;;  %v449_v5 = vld [vmem:[#allocation7 + $0x10] sm:$0xff]  ;;  %vm530_vm2 = vcmask 1040384  }
  0x74   : > { %426 = vst.msk [vmem:[#allocation2 + $0x10] sm:$0xff] %vm423_vm0, %v2174_v0  ;;  %1722 = vmatprep.mubr.msk.f32.mxu0 %vm2175_vm1, %v2174_v0  ;;  %1733 = vmatprep.mubr.msk.f32.mxu1 %vm2175_vm1, %v2174_v0  ;;  %v431_v6 = vld [vmem:[%s366_s24] sm:$0xff]  ;;  %v1618_v7 = vld [vmem:[%s366_s24 + $0x8] sm:$0xff]  ;;  %v1619_v8 = vld [vmem:[%s366_s24 + $0x10] sm:$0xff]  ;;  %vm612_vm3 = vcmask 1046528   ;;  %vm427_vm4 = vcmask 523264  }
  0x75   : > { %1715 = vmatpush3.msra.mxu0 %v455_v1  ;;  %1726 = vmatpush3.msra.mxu1 %v450_v4  ;;  %v434_v9 = vmax.f32 %v431_v6, %v1618_v7  ;;  %v1620_v10 = vld [vmem:[%s366_s24 + $0x18] sm:$0xff]  ;;  %v448_v11 = vld [vmem:[#allocation7 + $0x8] sm:$0xff]  ;;  %v452_v12 = vld [vmem:[#allocation7 + $0x20] sm:$0xff]  ;;  %428 = vst.msk [vmem:[#allocation3] sm:$0xff] %vm427_vm4, %v2174_v0  ;;  %p420_p10 = scmp.lt.s32.totalorder %s2248_s13, 1  ;;  %s1617_s25 = sshll.u32 %s2385_s3, 3 }
  0x76   : > { %1716 = vmatprep.subr.mxu0 %v2174_v0  ;;  %1727 = vmatprep.subr.mxu1 %v2174_v0  ;;  %v439_v13 = vmax.f32 %v1619_v8, %v1620_v10  ;;  %v447_v14 = vld [vmem:[#allocation7] sm:$0xff]  ;;  %v610_v17 = vld [vmem:[#allocation7 + $0x58] sm:$0xff]  ;;  %v609_v22 = vld [vmem:[#allocation7 + $0x50] sm:$0xff]  ;;  %430 = vst.msk [vmem:[#allocation3 + $0x10] sm:$0xff] %vm427_vm4, %v2174_v0  ;;  %s1638_s5 = sshll.u32 %s2248_s13, 7  ;;  %s419_s22 = scalar_lea.vmem [#allocation13], %s1617_s25 }
  0x77   : > { %1717 = vmatpush3.msra.mxu0 %v454_v2  ;;  %1728 = vmatpush3.msra.mxu1 %v449_v5  ;;  %v608_v26 = vld [vmem:[#allocation7 + $0x48] sm:$0xff]  ;;  %v607_v27 = vld [vmem:[#allocation7 + $0x40] sm:$0xff]  ;;  %v710_v29 = vld [vmem:[#allocation9 + $0x38] sm:$0xff]  ;;  %s421_s21 = scalar_select %p420_p10, %s2248_s13, 1 }
  0x78   : > { %1718 = vmatprep.subr.mxu0 %v2174_v0  ;;  %1729 = vmatprep.subr.mxu1 %v2174_v0  ;;  %v2416_v15 = vmax.f32 %v434_v9, %v439_v13  ;;  %v709_v30 = vld [vmem:[#allocation9 + $0x30] sm:$0xff]  ;;  %v705_v31 = vld [vmem:[#allocation9 + $0x18] sm:$0xff]  ;;  %v708_v32 = vld [vmem:[#allocation9 + $0x28] sm:$0xff]  ;;  %s1484_s24 = sshll.u32 %s419_s22, 4  ;;  %s1482_s26 = scalar_lea.hbm %s2591_s9, %s1638_s5  ;;  %s1485_s24 = int_to_ptr.vmem [resolvable:$true] %s1484_s24 }
  0x79   : > { %1719 = vmatpush3.msra.mxu0 %v453_v3  ;;  %1730 = vmatpush3.msra.mxu1 %v448_v11  ;;  %v704_v33 = vld [vmem:[#allocation9 + $0x10] sm:$0xff]  ;;  %v707_v34 = vld [vmem:[#allocation9 + $0x20] sm:$0xff]  ;;  %v703_v35 = vld [vmem:[#allocation9 + $0x8] sm:$0xff]  ;;  %s422_s29 = scalar_lea.vmem %s2590_s8, %s421_s21  ;;  %s1471_s27 = scalar_lea.sflag [#allocation6], %s2385_s3 }
  0x7a   : > { %1720 = vmatprep.subr.mxu0 %v2174_v0  ;;  %1731 = vmatprep.subr.mxu1 %v2174_v0  ;;  %443 = vst.msk [vmem:[#allocation2 + $0x8] sm:$0xff] %vm423_vm0, %v2416_v15  ;;  %v444_v16 = vld [vmem:[#allocation2] sm:$0xff]  ;;  %v702_v36 = vld [vmem:[#allocation9] sm:$0xff]  ;;  %v864_v48 = vld [vmem:[#allocation9 + $0x58] sm:$0xff]  ;;  %s2093_s14 = scalar_lea.vmem %s1485_s24, 128  ;;  %p2618_p7 = scmp.ne.s32.totalorder %s2608_s19, 0 }
  0x7b   : > { %1721 = vmatpush3.msra.mxu0 %v452_v12  ;;  %1732 = vmatpush3.msra.mxu1 %v447_v14  ;;  %v2423_v18 = vrot.slane %v444_v16, 7  ;;  %v446_v19 = vld [vmem:[#allocation2 + $0x10] sm:$0xff]  ;;  %v1624_v42 = vld [vmem:[%s2584_s2] ss:$0 sm:$0xff]  ;;  %v862_v53 = vld [vmem:[#allocation9 + $0x48] sm:$0xff]  ;;  %p2094_p12 = scmp.ne.s32.totalorder %s1485_s24, %s2093_s14  ;;  %s2176_s20 = smov [#allocation13]  }
  0x7c   : > { %1736 = vmatprep.subr.mxu0 %v2174_v0  ;;  %1747 = vmatprep.subr.mxu1 %v2174_v0  ;;  %v2428_v24 = vrot.slane %v446_v19, 1  ;;  %v863_v51 = vld [vmem:[#allocation9 + $0x50] sm:$0xff]  ;;  %v861_v55 = vld [vmem:[#allocation9 + $0x40] sm:$0xff]  ;;  %v964_v57 = vld [vmem:[#allocation10 + $0x38] sm:$0xff]  ;;  %s2097_s13 = sshll.u32 %s2176_s20, 4  ;;  %s2098_s13 = int_to_ptr.vmem [resolvable:$false] %s2097_s13 }
  0x7d   : > { %v963_v58 = vld [vmem:[#allocation10 + $0x30] sm:$0xff]  ;;  %v959_v59 = vld [vmem:[#allocation10 + $0x18] sm:$0xff]  ;;  %v962_v60 = vld [vmem:[#allocation10 + $0x28] sm:$0xff]  ;;  %p2095_p1 = pnand %p2094_p12, %p2618_p7  ;;  %s2099_s21 = scalar_lea.vmem %s2098_s13, 256 }
  0x7e   : > { %v958_v61 = vld [vmem:[#allocation10 + $0x10] sm:$0xff]  ;;  %v961_v62 = vld [vmem:[#allocation10 + $0x20] sm:$0xff]  ;;  %v957_v63 = vld [vmem:[#allocation10 + $0x8] sm:$0xff]  ;;  %p2100_p0 = scmp.lt.s32.totalorder %s1485_s24, %s2098_s13  ;;  %p2101_p11 = scmp.lt.s32.totalorder %s2099_s21, %s2093_s14 }
  0x7f   : > { %v956_v1 = vld [vmem:[#allocation10] sm:$0xff]  ;;  %v1628_v7 = vld [vmem:[%s2586_s4] ss:$0 sm:$0xff]  ;;  %v1118_v14 = vld [vmem:[#allocation10 + $0x58] sm:$0xff]  ;;  %p2096_p13 = pneg %p2095_p1 }
  0x80   : > { %v1117_v19 = vld [vmem:[#allocation10 + $0x50] sm:$0xff]  ;;  %p2102_p5 = por %p2101_p11, %p2100_p0 }
  0x81   : > { %v445_v20 = vld [vmem:[#allocation2 + $0x8] sm:$0xff] }
  0x82   : > { %1723 = vmatmul.mubr.msk.f32.vlgmr.msra.gmra.mxu0 %vm423_vm0, %v445_v20  ;;  %v532_v21 = vrot.slane %v445_v20, 7  ;;  %v613_v23 = vrot.slane %v445_v20, 1  ;;  %p2103_p6 = pnand %p2102_p5, %p2096_p13 }
  0x83   : > { %1737 = vmatpush3.msra.mxu0 %v610_v17  ;;  %1744 = vmatprep.mubr.msk.f32.mxu0 %vm2175_vm1, %v2174_v0 }
  0x84   : > { %1738 = vmatprep.subr.mxu0 %v2174_v0  ;;  %v533_v25 = vsel %vm530_vm2, %v2423_v18, %v532_v21  ;;  %v615_v28 = vsel %vm612_vm3, %v613_v23, %v2428_v24  ;;  %v1116_v21 = vld [vmem:[#allocation10 + $0x48] sm:$0xff] }
  0x85   : > { %1739 = vmatpush3.msra.mxu0 %v609_v22  ;;  %1734 = vmatmul.mubr.msk.f32.vlgmr.msra.gmra.mxu1 %vm423_vm0, %v533_v25  ;;  %v1115_v22 = vld [vmem:[#allocation10 + $0x40] sm:$0xff]  ;;  %v1225_v25 = vld [vmem:[#allocation12 + $0x70] sm:$0xff] }
  0x86   : > { %1740 = vmatprep.subr.mxu0 %v2174_v0  ;;  %1755 = vmatprep.mubr.msk.f32.mxu1 %vm2175_vm1, %v2174_v0 }
  0x87   : > { %1741 = vmatpush3.msra.mxu0 %v608_v26  ;;  %1748 = vmatpush3.msra.mxu1 %v710_v29  ;;  %v1217_v26 = vld [vmem:[#allocation12 + $0x38] sm:$0xff] }
  0x88   : > { %1742 = vmatprep.subr.mxu0 %v2174_v0  ;;  %1749 = vmatprep.subr.mxu1 %v2174_v0  ;;  %v1222_v29 = vld [vmem:[#allocation12 + $0x58] sm:$0xff] }
  0x89   : > { %1743 = vmatpush3.msra.mxu0 %v607_v27  ;;  %1750 = vmatpush3.msra.mxu1 %v709_v30  ;;  %v1223_v27 = vld [vmem:[#allocation12 + $0x60] sm:$0xff]  ;;  %v1215_v30 = vld [vmem:[#allocation12 + $0x28] sm:$0xff] }
  0x8a   : > { %1745 = vmatmul.mubr.msk.f32.vlgmr.msra.gmra.mxu0 %vm423_vm0, %v615_v28  ;;  %1758 = vmatprep.subr.mxu0 %v2174_v0  ;;  %v1216_v28 = vld [vmem:[#allocation12 + $0x30] sm:$0xff] }
  0x8b   : > { %1766 = vmatprep.mubr.msk.f32.mxu0 %vm2175_vm1, %v2174_v0  ;;  %1759 = vmatpush3.msra.mxu0 %v705_v31  ;;  %v1221_v31 = vld [vmem:[#allocation12 + $0x50] sm:$0xff] }
  0x8c   : > { %1760 = vmatprep.subr.mxu0 %v2174_v0  ;;  %1751 = vmatprep.subr.mxu1 %v2174_v0 }
  0x8d   : > { %1761 = vmatpush3.msra.mxu0 %v704_v33  ;;  %1752 = vmatpush3.msra.mxu1 %v708_v32  ;;  %v1214_v32 = vld [vmem:[#allocation12 + $0x20] sm:$0xff]  ;;  %v1220_v33 = vld [vmem:[#allocation12 + $0x48] sm:$0xff] }
  0x8e   : > { %1762 = vmatprep.subr.mxu0 %v2174_v0  ;;  %1753 = vmatprep.subr.mxu1 %v2174_v0 }
  0x8f   : > { %1754 = vmatpush3.msra.mxu1 %v707_v34  ;;  %1763 = vmatpush3.msra.mxu0 %v703_v35  ;;  %v1213_v34 = vld [vmem:[#allocation12 + $0x18] sm:$0xff]  ;;  %v1219_v35 = vld [vmem:[#allocation12 + $0x40] sm:$0xff] }
  0x90   : > { %1769 = vmatprep.subr.mxu1 %v2174_v0  ;;  %1764 = vmatprep.subr.mxu0 %v2174_v0 }
  0x91   : > { %1765 = vmatpush3.msra.mxu0 %v702_v36  ;;  %v1212_v36 = vld [vmem:[#allocation12 + $0x10] sm:$0xff] }
  0x92   : > { %1780 = vmatprep.subr.mxu0 %v2174_v0 }
 0x142   : > { %v525_v37 = vpop.f32.mrf.mxu0 }
 0x144   : > { %v1724_v38 = vpop.f32.mrf.mxu0 }
 0x145   : > { %v602_v39 = vpop.f32.mrf.mxu1  ;;  %v1210_v38 = vld [vmem:[#allocation12] sm:$0xff] }
 0x146   : > { %v603_v41 = vadd.f32 %v602_v39, %v525_v37  ;;  %v1211_v37 = vld [vmem:[#allocation12 + $0x8] sm:$0xff] }
 0x147   : > { %v1735_v40 = vpop.f32.mrf.mxu1 }
 0x14a   : > { %v684_v43 = vpop.f32.mrf.mxu0 }
 0x14b   : > { %v688_v44 = vadd.f32 %v684_v43, %v603_v41 }
 0x14c   : > { %v1746_v45 = vpop.f32.mrf.mxu0 }
 0x14d   : > { %v695_v46 = vadd.f32 %v1624_v42, %v688_v44  ;;  %v1632_v44 = vld [vmem:[%s2588_s6] ss:$0 sm:$0xff] }
 0x14f   : > { %v696_v47 = vmax.f32 %v695_v46, 0.0 }
 0x151   : > { %698 = vst.msk [vmem:[#allocation2 + $0x8] sm:$0xff] %vm423_vm0, %v696_v47 }
 0x158   : > { %v700_v49 = vld [vmem:[#allocation2 + $0x8] sm:$0xff] }
 0x159   : > { %1756 = vmatmul.mubr.msk.f32.vlgmr.msra.gmra.mxu1 %vm423_vm0, %v700_v49  ;;  %v786_v50 = vrot.slane %v700_v49, 7  ;;  %v866_v54 = vrot.slane %v700_v49, 1 }
 0x15a   : > { %1770 = vmatpush3.msra.mxu1 %v864_v48  ;;  %1777 = vmatprep.mubr.msk.f32.mxu1 %vm2175_vm1, %v2174_v0 }
 0x15b   : > { %1771 = vmatprep.subr.mxu1 %v2174_v0  ;;  %v787_v52 = vsel %vm530_vm2, %v2423_v18, %v786_v50  ;;  %v868_v56 = vsel %vm612_vm3, %v866_v54, %v2428_v24  ;;  %v1207_v50 = vld [vmem:[#allocation3] sm:$0xff] }
 0x15c   : > { %1772 = vmatpush3.msra.mxu1 %v863_v51  ;;  %1767 = vmatmul.mubr.msk.f32.vlgmr.msra.gmra.mxu0 %vm423_vm0, %v787_v52  ;;  %v1384_v51 = vld [vmem:[#allocation12 + $0xb8] sm:$0xff]  ;;  %v1301_v52 = vrot.slane %v1207_v50, 7 }
 0x15d   : > { %1773 = vmatprep.subr.mxu1 %v2174_v0  ;;  %1788 = vmatprep.mubr.msk.f32.mxu0 %vm2175_vm1, %v2174_v0 }
 0x15e   : > { %1774 = vmatpush3.msra.mxu1 %v862_v53  ;;  %1781 = vmatpush3.msra.mxu0 %v964_v57  ;;  %v1382_v57 = vld [vmem:[#allocation12 + $0xa8] sm:$0xff] }
 0x15f   : > { %1775 = vmatprep.subr.mxu1 %v2174_v0  ;;  %1782 = vmatprep.subr.mxu0 %v2174_v0 }
 0x160   : > { %1776 = vmatpush3.msra.mxu1 %v861_v55  ;;  %1783 = vmatpush3.msra.mxu0 %v963_v58  ;;  %v1383_v55 = vld [vmem:[#allocation12 + $0xb0] sm:$0xff]  ;;  %v1381_v58 = vld [vmem:[#allocation12 + $0xa0] sm:$0xff] }
 0x161   : > { %1778 = vmatmul.mubr.msk.f32.vlgmr.msra.gmra.mxu1 %vm423_vm0, %v868_v56  ;;  %1791 = vmatprep.subr.mxu1 %v2174_v0 }
 0x162   : > { %1799 = vmatprep.mubr.msk.f32.mxu1 %vm2175_vm1, %v2174_v0  ;;  %1792 = vmatpush3.msra.mxu1 %v959_v59  ;;  %v1380_v59 = vld [vmem:[#allocation12 + $0x98] sm:$0xff] }
 0x163   : > { %1793 = vmatprep.subr.mxu1 %v2174_v0  ;;  %1784 = vmatprep.subr.mxu0 %v2174_v0 }
 0x164   : > { %1794 = vmatpush3.msra.mxu1 %v958_v61  ;;  %1785 = vmatpush3.msra.mxu0 %v962_v60  ;;  %v1379_v60 = vld [vmem:[#allocation12 + $0x90] sm:$0xff]  ;;  %v1209_v61 = vld [vmem:[#allocation3 + $0x10] sm:$0xff] }
 0x165   : > { %1795 = vmatprep.subr.mxu1 %v2174_v0  ;;  %1786 = vmatprep.subr.mxu0 %v2174_v0 }
 0x166   : > { %1787 = vmatpush3.msra.mxu0 %v961_v62  ;;  %1796 = vmatpush3.msra.mxu1 %v957_v63  ;;  %v1378_v62 = vld [vmem:[#allocation12 + $0x88] sm:$0xff] }
 0x167   : > { %1802 = vmatprep.subr.mxu0 %v2174_v0  ;;  %1797 = vmatprep.subr.mxu1 %v2174_v0 }
 0x168   : > { %1798 = vmatpush3.msra.mxu1 %v956_v1  ;;  %v1387_v1 = vrot.slane %v1209_v61, 1 }
 0x169   : > { %1813 = vmatprep.subr.mxu1 %v2174_v0 }
 0x219   : > { %v780_v2 = vpop.f32.mrf.mxu1 }
 0x21b   : > { %v1757_v3 = vpop.f32.mrf.mxu1 }
 0x21c   : > { %v856_v4 = vpop.f32.mrf.mxu0 }
 0x21d   : > { %v857_v6 = vadd.f32 %v856_v4, %v780_v2  ;;  %v1377_v2 = vld [vmem:[#allocation12 + $0x80] sm:$0xff] }
 0x21e   : > { %v1768_v5 = vpop.f32.mrf.mxu0 }
 0x221   : > { %v937_v8 = vpop.f32.mrf.mxu1 }
 0x222   : > { %v941_v9 = vadd.f32 %v937_v8, %v857_v6 }
 0x223   : > { %v1779_v10 = vpop.f32.mrf.mxu1 }
 0x224   : > { %v948_v11 = vadd.f32 %v1628_v7, %v941_v9 }
 0x226   : > { %v949_v12 = vadd.f32 %v948_v11, %v2416_v15 }
 0x228   : > { %v950_v13 = vmax.f32 %v949_v12, 0.0 }
 0x22a   : > { %952 = vst.msk [vmem:[#allocation2 + $0x8] sm:$0xff] %vm423_vm0, %v950_v13 }
 0x231   : > { %v954_v16 = vld [vmem:[#allocation2 + $0x8] sm:$0xff] }
 0x232   : > { %1789 = vmatmul.mubr.msk.f32.vlgmr.msra.gmra.mxu0 %vm423_vm0, %v954_v16  ;;  %v1040_v17 = vrot.slane %v954_v16, 7  ;;  %v1120_v15 = vrot.slane %v954_v16, 1 }
 0x233   : > { %1803 = vmatpush3.msra.mxu0 %v1118_v14  ;;  %1810 = vmatprep.mubr.msk.f32.mxu0 %vm2175_vm1, %v2174_v0 }
 0x234   : > { %1804 = vmatprep.subr.mxu0 %v2174_v0  ;;  %v1041_v20 = vsel %vm530_vm2, %v2423_v18, %v1040_v17  ;;  %v1122_v23 = vsel %vm612_vm3, %v1120_v15, %v2428_v24  ;;  %v1226_v18 = vld [vmem:[#allocation12 + $0x78] sm:$0xff]  ;;  %v1224_v24 = vld [vmem:[#allocation12 + $0x68] sm:$0xff] }
 0x235   : > { %1805 = vmatpush3.msra.mxu0 %v1117_v19  ;;  %1800 = vmatmul.mubr.msk.f32.vlgmr.msra.gmra.mxu1 %vm423_vm0, %v1041_v20 }
 0x236   : > { %1806 = vmatprep.subr.mxu0 %v2174_v0  ;;  %1829 = vmatprep.mubr.msk.f32.mxu1 %vm2175_vm1, %v2174_v0 }
 0x237   : > { %1807 = vmatpush3.msra.mxu0 %v1116_v21  ;;  %1814 = vmatpush3.msra.mxu1 %v1226_v18 }
 0x238   : > { %1808 = vmatprep.subr.mxu0 %v2174_v0  ;;  %1815 = vmatprep.subr.mxu1 %v2174_v0 }
 0x239   : > { %1809 = vmatpush3.msra.mxu0 %v1115_v22  ;;  %1816 = vmatpush3.msra.mxu1 %v1225_v25 }
 0x23a   : > { %1811 = vmatmul.mubr.msk.f32.vlgmr.msra.gmra.mxu0 %vm423_vm0, %v1122_v23  ;;  %1832 = vmatprep.subr.mxu0 %v2174_v0 }
 0x23b   : > { %1848 = vmatprep.mubr.msk.f32.mxu0 %vm2175_vm1, %v2174_v0  ;;  %1817 = vmatprep.subr.mxu1 %v2174_v0 }
 0x23c   : > { %1818 = vmatpush3.msra.mxu1 %v1224_v24  ;;  %1833 = vmatpush3.msra.mxu0 %v1217_v26 }
 0x23d   : > { %1819 = vmatprep.subr.mxu1 %v2174_v0  ;;  %1834 = vmatprep.subr.mxu0 %v2174_v0 }
 0x23e   : > { %1820 = vmatpush3.msra.mxu1 %v1223_v27  ;;  %1835 = vmatpush3.msra.mxu0 %v1216_v28 }
 0x23f   : > { %1821 = vmatprep.subr.mxu1 %v2174_v0  ;;  %1836 = vmatprep.subr.mxu0 %v2174_v0 }
 0x240   : > { %1822 = vmatpush3.msra.mxu1 %v1222_v29  ;;  %1837 = vmatpush3.msra.mxu0 %v1215_v30 }
 0x241   : > { %1823 = vmatprep.subr.mxu1 %v2174_v0  ;;  %1838 = vmatprep.subr.mxu0 %v2174_v0 }
 0x242   : > { %1824 = vmatpush3.msra.mxu1 %v1221_v31  ;;  %1839 = vmatpush3.msra.mxu0 %v1214_v32 }
 0x243   : > { %1825 = vmatprep.subr.mxu1 %v2174_v0  ;;  %1840 = vmatprep.subr.mxu0 %v2174_v0 }
 0x244   : > { %1826 = vmatpush3.msra.mxu1 %v1220_v33  ;;  %1841 = vmatpush3.msra.mxu0 %v1213_v34 }
 0x245   : > { %1827 = vmatprep.subr.mxu1 %v2174_v0  ;;  %1842 = vmatprep.subr.mxu0 %v2174_v0 }
 0x246   : > { %1828 = vmatpush3.msra.mxu1 %v1219_v35  ;;  %1843 = vmatpush3.msra.mxu0 %v1212_v36 }
 0x247   : > { %1844 = vmatprep.subr.mxu0 %v2174_v0  ;;  %1851 = vmatprep.subr.mxu1 %v2174_v0 }
 0x248   : > { %1845 = vmatpush3.msra.mxu0 %v1211_v37 }
 0x249   : > { %1846 = vmatprep.subr.mxu0 %v2174_v0 }
 0x24a   : > { %1847 = vmatpush3.msra.mxu0 %v1210_v38 }
 0x2f2   : > { %v1034_v39 = vpop.f32.mrf.mxu0 }
 0x2f4   : > { %v1790_v40 = vpop.f32.mrf.mxu0 }
 0x2f5   : > { %v1110_v41 = vpop.f32.mrf.mxu1 }
 0x2f6   : > { %v1111_v43 = vadd.f32 %v1110_v41, %v1034_v39 }
 0x2f7   : > { %v1801_v42 = vpop.f32.mrf.mxu1 }
 0x2fa   : > { %v1191_v45 = vpop.f32.mrf.mxu0 }
 0x2fb   : > { %v1195_v46 = vadd.f32 %v1191_v45, %v1111_v43 }
 0x2fc   : > { %v1812_v47 = vpop.f32.mrf.mxu0 }
 0x2fd   : > { %v1202_v48 = vadd.f32 %v1632_v44, %v1195_v46 }
 0x2ff   : > { %v1203_v49 = vmax.f32 %v1202_v48, 0.0 }
 0x301   : > { %1206 = vst.msk [vmem:[#allocation3 + $0x8] sm:$0xff] %vm427_vm4, %v1203_v49 }
 0x308   : > { %v1208_v53 = vld [vmem:[#allocation3 + $0x8] sm:$0xff] }
 0x309   : > { %1830 = vmatmul.mubr.msk.f32.vlgmr.msra.gmra.mxu1 %vm427_vm4, %v1208_v53  ;;  %v1302_v54 = vrot.slane %v1208_v53, 7  ;;  %v1386_v63 = vrot.slane %v1208_v53, 1 }
 0x30a   : > { %1852 = vmatpush3.msra.mxu1 %v1384_v51  ;;  %1867 = vmatprep.mubr.msk.f32.mxu1 %vm2175_vm1, %v2174_v0 }
 0x30b   : > { %1853 = vmatprep.subr.mxu1 %v2174_v0  ;;  %v1303_v56 = vsel %vm530_vm2, %v1301_v52, %v1302_v54  ;;  %v1388_v3 = vsel %vm612_vm3, %v1386_v63, %v1387_v1 }
 0x30c   : > { %1854 = vmatpush3.msra.mxu1 %v1383_v55  ;;  %1849 = vmatmul.mubr.msk.f32.vlgmr.msra.gmra.mxu0 %vm427_vm4, %v1303_v56 }
 0x30d   : > { %1855 = vmatprep.subr.mxu1 %v2174_v0 }
 0x30e   : > { %1856 = vmatpush3.msra.mxu1 %v1382_v57 }
 0x30f   : > { %1857 = vmatprep.subr.mxu1 %v2174_v0 }
 0x310   : > { %1858 = vmatpush3.msra.mxu1 %v1381_v58 }
 0x311   : > { %1859 = vmatprep.subr.mxu1 %v2174_v0 }
 0x312   : > { %1860 = vmatpush3.msra.mxu1 %v1380_v59 }
 0x313   : > { %1861 = vmatprep.subr.mxu1 %v2174_v0 }
 0x314   : > { %1862 = vmatpush3.msra.mxu1 %v1379_v60 }
 0x315   : > { %1863 = vmatprep.subr.mxu1 %v2174_v0 }
 0x316   : > { %1864 = vmatpush3.msra.mxu1 %v1378_v62 }
 0x317   : > { %1865 = vmatprep.subr.mxu1 %v2174_v0  ;;  %v1636_v0 = vld [vmem:[%s422_s29] ss:$0 sm:$0xff] }
 0x318   : > { %1866 = vmatpush3.msra.mxu1 %v1377_v2 }
 0x319   : > { %1868 = vmatmul.mubr.msk.f32.vlgmr.msra.gmra.mxu1 %vm427_vm4, %v1388_v3 }
 0x3c9   : > { %v1296_v4 = vpop.f32.mrf.mxu1 }
 0x3cb   : > { %v1831_v5 = vpop.f32.mrf.mxu1 }
 0x3cc   : > { %v1372_v6 = vpop.f32.mrf.mxu0 }
 0x3cd   : > { %v1373_v8 = vadd.f32 %v1372_v6, %v1296_v4 }
 0x3ce   : > { %v1850_v7 = vpop.f32.mrf.mxu0 }
 0x3d9   : > { %v1457_v9 = vpop.f32.mrf.mxu1 }
 0x3da   : > { %v1461_v10 = vadd.f32 %v1457_v9, %v1373_v8 }
 0x3db   : > { %v1869_v11 = vpop.f32.mrf.mxu1 }
 0x3dc   : > { %v1468_v12 = vadd.f32 %v1636_v0, %v1461_v10 }
 0x3de   : > { %1469 = vst.msk [vmem:[%s419_s22] sm:$0xff] %vm427_vm4, %v1468_v12 }
 0x3df   : > { %2106 = shalt.err (!%p2103_p6)
}
 0x3e0   : > { %s2107_s25 = scalar_lea.hbm %s1482_s26, 128  ;;  %s2111_s1 = scalar_lea.hbm %s2591_s9, 256 }
 0x3e1   : > { %p2108_p4 = scmp.ne.s32.totalorder %s1482_s26, %s2107_s25  ;;  %p2112_p2 = scmp.lt.s32.totalorder %s1482_s26, %s2591_s9 }
 0x3e2   : > { %p2113_p3 = scmp.lt.s32.totalorder %s2111_s1, %s2107_s25 }
 0x3e3   : > { %p2109_p8 = pnand %p2108_p4, %p2618_p7 }
 0x3e4   : > { %p2114_p10 = por %p2113_p3, %p2112_p2 }
 0x3e5   : > { %p2110_p9 = pneg %p2109_p8 }
 0x3e7   : > { %p2115_p12 = pnand %p2114_p10, %p2110_p9 }
 0x3e9   : > { %2118 = shalt.err (!%p2115_p12)
}
 0x3ea   : > { %1888 = dma.vmem_to_hbm [thread:$0]  (%p2618_p7), %s1485_s24, 128, %s1482_s26, %s1471_s27  }
 0x3eb PF: > { %s1496_s22 = sand.u32 1, %s2153_s30   ;;  %p2619_p1 = scmp.ne.s32.totalorder %s2602_s16, 0 }
 0x3ec   : > { %p2620_p13 = scmp.ge.s32.totalorder %s2165_s12, 2  ;;  %s1497_s15 = scalar_lea.sflag [#allocation6], %s1496_s22 }
 0x3ee   : > { %p1908_p0 = pnand %p2620_p13, %p2619_p1 }
 0x3f0   : > { %p1909_p11 = pneg %p1908_p0 }
 0x3f2   : > { %2148 = dma.done.wait (%p1909_p11), %s1497_s15, 128  }
 0x3f3   : > { %2150 = vsyncadd (%p1909_p11), %s1497_s15, 4294967168  ;;  %p24_p5 = scmp.ge.s32.totalorder %s2327_s18, 4   ;;  %s2621_s30 = smov %s2157_s10 }
 0x3f4   : > { %s2622_s10 = smov %s2161_s11  ;;  %s2623_s11 = smov %s2343_s23 }
 0x3f5   : > { %s2624_s12 = smov %s2327_s18  ;;  %26 = sbr.rel (!%p24_p5) target bundleno = 11 (0xb), region = 135 }
 0x3fa   :  { %1502 = vsyncpa [#allocation5], 1 }
 0x3fb   :  { %1504 = vsyncpa [#allocation5 + $0x1], 1 }
 0x3fc   :  { %1505 = vsyncpa [#allocation8], 1 }
 0x3fd   :  { %1506 = vsyncpa [#allocation11], 1 }
 0x3fe   :  { %1507 = vsyncpa [#allocation6], 1 }
 0x3ff   :  { %1509 = vsyncpa [#allocation6 + $0x1], 1 }

</bundles_post_ra>
